<compile_context>
chip_gen: v5e
topology: v5e:2x2
jax: 0.10.0
libtpu: 0.0.40
codegen_flags: <defaults>
</compile_context>

<pallas_src>
import math

import jax
import jax.numpy as jnp
from jax.experimental import pallas as pl
from jax.experimental.pallas import tpu as pltpu


def _round_up(x, m):
    return ((x + m - 1) // m) * m


def _device_kind():
    try:
        return jax.devices()[0].device_kind.lower()
    except Exception:
        return ""


def _is_v7x():
    return "v7" in _device_kind()


def default_compute_dtype():
    """bf16 MXU operands on v6e/v7x (bf16-native MXU + less weight traffic),
    f32 elsewhere.  Accumulation / bias / ReLU stay f32 in all cases."""
    dk = _device_kind()
    return jnp.bfloat16 if ("v6" in dk or "v7" in dk) else jnp.float32


# ----------------------------------------------------------------------------
# Kernel: fused (x @ W1 + b1).relu() @ W2 + b2 -> relu, f32 accumulation.
# ----------------------------------------------------------------------------
def fcnet_kernel(x_ref, w1_ref, b1_ref, w2_ref, b2_ref, o_ref):
    x = x_ref[...].astype(w1_ref.dtype)          # VMEM cast (no HBM cost)
    h = jnp.dot(x, w1_ref[...], preferred_element_type=jnp.float32)
    h = jnp.maximum(h + b1_ref[...], 0.0)
    y = jnp.dot(h.astype(w2_ref.dtype), w2_ref[...],
                preferred_element_type=jnp.float32)
    y = jnp.maximum(y + b2_ref[...], 0.0)
    o_ref[...] = y.astype(o_ref.dtype)


# ----------------------------------------------------------------------------
# One-time parameter prep (hoisted out of the per-call hot path).
# ----------------------------------------------------------------------------
def fcnet_prepare_params(params, compute_dtype=jnp.float32):
    """params: ((W1[D0,D1], b1), (W2[D1,D2], b2)) with W already the effective
    weight-normalized matrix, transposed to [in, out]."""
    (w1, b1), (w2, b2) = params
    return (w1.astype(compute_dtype),
            b1.reshape(1, -1).astype(jnp.float32),
            w2.astype(compute_dtype),
            b2.reshape(1, -1).astype(jnp.float32))


# ----------------------------------------------------------------------------
# Forward wrapper.
# ----------------------------------------------------------------------------
def fcnet_forward(x, prepared_params, *, tm_max=256, out_dtype=None):
    """x: [B, N, D0].  prepared_params: output of fcnet_prepare_params."""
    w1, b1, w2, b2 = prepared_params
    B, N, D0 = x.shape
    D1 = w1.shape[1]
    D2 = w2.shape[1]
    M = B * N
    odt = out_dtype if out_dtype is not None else x.dtype

    # Row tile: as big as allowed (multiple of 16 so f32/bf16 sublane packing
    # both divide it).  Ragged last block is edge-masked by Pallas.
    tm = min(tm_max, _round_up(M, 16))
    if _is_v7x() and pl.cdiv(M, tm) == 1 and M >= 256:
        # v7x has 2 TensorCores: keep >=2 parallel grid steps when there is
        # enough work.  On v5e/v6e (1 TC) extra steps are pure overhead.
        tm = _round_up(pl.cdiv(M, 2), 16)

    x2 = x.reshape(M, D0)

    out = pl.pallas_call(
        fcnet_kernel,
        out_shape=jax.ShapeDtypeStruct((M, D2), odt),
        grid_spec=pltpu.PrefetchScalarGridSpec(
            num_scalar_prefetch=0,
            grid=(pl.cdiv(M, tm),),
            in_specs=[
                pl.BlockSpec((tm, D0), lambda i: (i, 0)),   # x tile
                pl.BlockSpec((D0, D1), lambda i: (0, 0)),   # W1 (resident)
                pl.BlockSpec((1, D1), lambda i: (0, 0)),    # b1 (f32)
                pl.BlockSpec((D1, D2), lambda i: (0, 0)),   # W2 (resident)
                pl.BlockSpec((1, D2), lambda i: (0, 0)),    # b2 (f32)
            ],
            out_specs=pl.BlockSpec((tm, D2), lambda i: (i, 0)),
        ),
        compiler_params=pltpu.CompilerParams(
            dimension_semantics=("parallel",),
            vmem_limit_bytes=32 * 1024 * 1024,
        ),
    )(x2, w1, b1, w2, b2)

    return out.reshape(B, N, D2)


# ----------------------------------------------------------------------------
# Weight-norm Linear init (emulates weight_norm(nn.Linear(...), dim=None)).
# ----------------------------------------------------------------------------
def init_weightnorm_linear(key, in_dim, out_dim, dtype=jnp.float32):
    kw, kb = jax.random.split(key)
    bound = 1.0 / math.sqrt(in_dim)
    v = jax.random.uniform(kw, (out_dim, in_dim), dtype, -bound, bound)
    b = jax.random.uniform(kb, (out_dim,), dtype, -bound, bound)
    g = jnp.sqrt(jnp.sum(v * v))                   # scalar g = ||V||_F at init
    w_eff = (g / jnp.sqrt(jnp.sum(v * v))) * v     # == v at init; kept explicit
    return w_eff.T, b.reshape(1, out_dim)


def fcnet_reference(x, params):
    (w1, b1), (w2, b2) = params
    h = jnp.maximum(x @ w1 + b1, 0.0)
    return jnp.maximum(h @ w2 + b2, 0.0)


if __name__ == "__main__":
    # FCNet(dims=[32, 64, 32], act='ReLU', dropout=0) on x: [batch=2, seq=8, 32]
    dims = [32, 64, 32]
    B, N = 2, 8

    key = jax.random.PRNGKey(0)
    kx, k1, k2 = jax.random.split(key, 3)
    x = jax.random.normal(kx, (B, N, dims[0]), jnp.float32)

    params = (
        init_weightnorm_linear(k1, dims[0], dims[1]),
        init_weightnorm_linear(k2, dims[1], dims[2]),
    )
    y_ref = fcnet_reference(x, params)

    # f32 path: exact match to the plain-JAX reference.
    prep_f32 = fcnet_prepare_params(params, compute_dtype=jnp.float32)
    y = fcnet_forward(x, prep_f32)
    jax.block_until_ready(y)
    assert y.shape == (B, N, dims[2])
    assert jnp.allclose(y, y_ref, atol=1e-5, rtol=1e-5)

    # Recommended operand dtype for the current chip (bf16 on v6e/v7x,
    # f32 on v5e); f32 accumulation + f32 epilogue regardless.
    prep_auto = fcnet_prepare_params(params, compute_dtype=default_compute_dtype())
    y_auto = fcnet_forward(x, prep_auto)
    jax.block_until_ready(y_auto)
    assert y_auto.shape == (B, N, dims[2])
    assert jnp.allclose(y_auto, y_ref, atol=1e-1, rtol=1e-1)

    # Ragged row count (M = 15, not a multiple of the tile): Pallas edge-masked
    # last block, no wrapper padding / slicing.
    x_odd = jax.random.normal(kx, (3, 5, dims[0]), jnp.float32)
    y_odd = fcnet_forward(x_odd, prep_f32)
    jax.block_until_ready(y_odd)
    assert jnp.allclose(y_odd, fcnet_reference(x_odd, params),
                        atol=1e-5, rtol=1e-5)

    print("KERNEL_OK")
</pallas_src>

<mosaic_0001>
module attributes {stable_mosaic.version = 11 : i64} {
  func.func @fcnet_kernel(%arg0: i32, %arg1: memref<16x32xf32, #tpu.memory_space<vmem>>, %arg2: memref<32x64xf32, #tpu.memory_space<vmem>>, %arg3: memref<1x64xf32, #tpu.memory_space<vmem>>, %arg4: memref<64x32xf32, #tpu.memory_space<vmem>>, %arg5: memref<1x32xf32, #tpu.memory_space<vmem>>, %arg6: memref<16x32xf32, #tpu.memory_space<vmem>>) attributes {dimension_semantics = [#tpu.dimension_semantics<parallel>], iteration_bounds = array<i64: 1>, scalar_prefetch = 0 : i64, scratch_operands = 0 : i64, tpu.core_type = #tpu.core_type<tc>, window_params = [{transform_indices = @transform_0, window_bounds = array<i64: 16, 32>}, {pipeline_mode = #tpu.pipeline_mode<synchronous>, transform_indices = @transform_1, window_bounds = array<i64: 32, 64>}, {pipeline_mode = #tpu.pipeline_mode<synchronous>, transform_indices = @transform_2, window_bounds = array<i64: 1, 64>}, {pipeline_mode = #tpu.pipeline_mode<synchronous>, transform_indices = @transform_3, window_bounds = array<i64: 64, 32>}, {pipeline_mode = #tpu.pipeline_mode<synchronous>, transform_indices = @transform_4, window_bounds = array<i64: 1, 32>}, {transform_indices = @transform_5, window_bounds = array<i64: 16, 32>}]} {
    %c0 = arith.constant 0 : index
    %c0_0 = arith.constant 0 : index
    %0 = vector.load %arg1[%c0, %c0_0] : memref<16x32xf32, #tpu.memory_space<vmem>>, vector<16x32xf32>
    %c0_1 = arith.constant 0 : index
    %c0_2 = arith.constant 0 : index
    %1 = vector.load %arg2[%c0_1, %c0_2] : memref<32x64xf32, #tpu.memory_space<vmem>>, vector<32x64xf32>
    %cst = arith.constant dense<0.000000e+00> : vector<16x64xf32>
    %2 = tpu.matmul %0, %1, %cst {dimension_numbers = #tpu.dot_dimension_numbers<[1], [0], [0], [1], [0, 0, 1, 1], [], []>} : vector<16x32xf32>, vector<32x64xf32>, vector<16x64xf32> -> vector<16x64xf32>
    %c0_3 = arith.constant 0 : index
    %c0_4 = arith.constant 0 : index
    %3 = vector.load %arg3[%c0_3, %c0_4] : memref<1x64xf32, #tpu.memory_space<vmem>>, vector<1x64xf32>
    %4 = vector.broadcast %3 : vector<1x64xf32> to vector<16x64xf32>
    %5 = arith.addf %2, %4 : vector<16x64xf32>
    %cst_5 = arith.constant 0.000000e+00 : f32
    %6 = vector.broadcast %cst_5 : f32 to vector<16x64xf32>
    %7 = arith.maximumf %5, %6 : vector<16x64xf32>
    %c0_6 = arith.constant 0 : index
    %c0_7 = arith.constant 0 : index
    %8 = vector.load %arg4[%c0_6, %c0_7] : memref<64x32xf32, #tpu.memory_space<vmem>>, vector<64x32xf32>
    %cst_8 = arith.constant dense<0.000000e+00> : vector<16x32xf32>
    %9 = tpu.matmul %7, %8, %cst_8 {dimension_numbers = #tpu.dot_dimension_numbers<[1], [0], [0], [1], [0, 0, 1, 1], [], []>} : vector<16x64xf32>, vector<64x32xf32>, vector<16x32xf32> -> vector<16x32xf32>
    %c0_9 = arith.constant 0 : index
    %c0_10 = arith.constant 0 : index
    %10 = vector.load %arg5[%c0_9, %c0_10] : memref<1x32xf32, #tpu.memory_space<vmem>>, vector<1x32xf32>
    %11 = vector.broadcast %10 : vector<1x32xf32> to vector<16x32xf32>
    %12 = arith.addf %9, %11 : vector<16x32xf32>
    %cst_11 = arith.constant 0.000000e+00 : f32
    %13 = vector.broadcast %cst_11 : f32 to vector<16x32xf32>
    %14 = arith.maximumf %12, %13 : vector<16x32xf32>
    %c0_12 = arith.constant 0 : index
    %c0_13 = arith.constant 0 : index
    %15 = vector.load %arg6[%c0_12, %c0_13] : memref<16x32xf32, #tpu.memory_space<vmem>>, vector<16x32xf32>
    tpu.vector_store %arg6[%c0_12, %c0_13], %14 {strides = array<i32>} : memref<16x32xf32, #tpu.memory_space<vmem>>, vector<16x32xf32>,
    return
  }
  func.func @transform_0(%arg0: i32) -> (i32, i32) {
    %c0_i32 = arith.constant 0 : i32
    %c0_i32_0 = arith.constant 0 : i32
    return %arg0, %c0_i32 : i32, i32
  }
  func.func @transform_1(%arg0: i32) -> (i32, i32) {
    %c0_i32 = arith.constant 0 : i32
    %c0_i32_0 = arith.constant 0 : i32
    %c0_i32_1 = arith.constant 0 : i32
    return %c0_i32, %c0_i32_0 : i32, i32
  }
  func.func @transform_2(%arg0: i32) -> (i32, i32) {
    %c0_i32 = arith.constant 0 : i32
    %c0_i32_0 = arith.constant 0 : i32
    %c0_i32_1 = arith.constant 0 : i32
    return %c0_i32, %c0_i32_0 : i32, i32
  }
  func.func @transform_3(%arg0: i32) -> (i32, i32) {
    %c0_i32 = arith.constant 0 : i32
    %c0_i32_0 = arith.constant 0 : i32
    %c0_i32_1 = arith.constant 0 : i32
    return %c0_i32, %c0_i32_0 : i32, i32
  }
  func.func @transform_4(%arg0: i32) -> (i32, i32) {
    %c0_i32 = arith.constant 0 : i32
    %c0_i32_0 = arith.constant 0 : i32
    %c0_i32_1 = arith.constant 0 : i32
    return %c0_i32, %c0_i32_0 : i32, i32
  }
  func.func @transform_5(%arg0: i32) -> (i32, i32) {
    %c0_i32 = arith.constant 0 : i32
    %c0_i32_0 = arith.constant 0 : i32
    return %arg0, %c0_i32 : i32, i32
  }
}

</mosaic_0001>

<bundles_post_ra>
// kernel: tpu_custom_call.1
= control target key start
LH: loop header
LB: loop body
LE: loop exit
PB: predicated region body
PF: predicated region fallthrough
CT: control target
= control target key end

     0   :  { %s262_s0 = inlined_call_operand.vmem [shape: f32[16,32], index: 0, kind: input, shape index: {}]   ;;  %s263_s1 = inlined_call_operand.vmem [shape: f32[32,64], index: 1, kind: input, shape index: {}]   ;;  %s264_s2 = inlined_call_operand.vmem [shape: f32[1,64], index: 2, kind: input, shape index: {}]   ;;  %s265_s3 = inlined_call_operand.vmem [shape: f32[64,32], index: 3, kind: input, shape index: {}]   ;;  %s266_s4 = inlined_call_operand.vmem [shape: f32[1,32], index: 4, kind: input, shape index: {}]   ;;  %s267_s5 = inlined_call_operand.hbm [shape: f32[16,32], index: 5, kind: output, shape index: {}]  }
   0x1   :  { %v26_v0 = vld [vmem:[%s263_s1 + $0x18] sm:$0xff]  ;;  %v25_v1 = vld [vmem:[%s263_s1 + $0x10] sm:$0xff]  ;;  %v24_v2 = vld [vmem:[%s263_s1 + $0x8] sm:$0xff] }
   0x2   :  { %131 = vmatpush.msra.mxu3 %v26_v0  ;;  %50 = vmatpush.msra.mxu0 %v26_v0  ;;  %v70_v3 = vld [vmem:[%s265_s3 + $0x38] sm:$0xff]  ;;  %v69_v4 = vld [vmem:[%s265_s3 + $0x30] sm:$0xff]  ;;  %v23_v5 = vld [vmem:[%s263_s1] sm:$0xff] }
   0x3   :  { %135 = vmatpush.msra.mxu2 %v70_v3  ;;  %90 = vmatpush.msra.mxu1 %v70_v3 }
   0x4   :  { %132 = vmatpush.msra.mxu3 %v25_v1  ;;  %51 = vmatpush.msra.mxu0 %v25_v1 }
   0x5   :  { %10 = vsyncpa [#allocation3], 0  ;;  %v22_v6 = vld [vmem:[%s262_s0 + $0x8] sm:$0xff]  ;;  %vm31_vm0 = vcmask 261120   ;;  %v21_v7 = vld [vmem:[%s262_s0] sm:$0xff]  ;;  %136 = vmatpush.msra.mxu2 %v69_v4  ;;  %91 = vmatpush.msra.mxu1 %v69_v4  ;;  %vm75_vm1 = vcmask 523264  }
   0x6   :  { %133 = vmatpush.msra.mxu3 %v24_v2  ;;  %52 = vmatpush.msra.mxu0 %v24_v2  ;;  %v68_v8 = vld [vmem:[%s265_s3 + $0x28] sm:$0xff]  ;;  %v67_v9 = vld [vmem:[%s265_s3 + $0x20] sm:$0xff]  ;;  %v66_v10 = vld [vmem:[%s265_s3 + $0x18] sm:$0xff]  ;;  %s115_s25 = sshll.u32 %s267_s5, 4  ;;  %s175_s26 = smov 128   ;;  %s116_s25 = int_to_ptr.hbm [resolvable:$true] %s115_s25 }
   0x7   :  { %137 = vmatpush.msra.mxu2 %v68_v8  ;;  %92 = vmatpush.msra.mxu1 %v68_v8  ;;  %v65_v11 = vld [vmem:[%s265_s3 + $0x10] sm:$0xff]  ;;  %v64_v12 = vld [vmem:[%s265_s3 + $0x8] sm:$0xff]  ;;  %v63_v13 = vld [vmem:[%s265_s3] sm:$0xff]  ;;  %s174_s3 = smov [#allocation2]  }
   0x8   :  { %134 = vmatpush.msra.mxu3 %v23_v5  ;;  %53 = vmatpush.msra.mxu0 %v23_v5  ;;  %v146_v14 = vld [vmem:[%s264_s2] ss:$0 sm:$0xff]  ;;  %s113_s2 = sshll.u32 %s174_s3, 4  ;;  %s114_s2 = int_to_ptr.vmem [resolvable:$true] %s113_s2 }
   0x9   :  { %128 = vmatmul.msk.f32.vlgmr.msra.gmra.mxu3 %vm31_vm0, %v22_v6  ;;  %127 = vmatmul.msk.f32.vlgmr.msra.gmra.mxu0 %vm31_vm0, %v21_v7  ;;  %v147_v21 = vld [vmem:[%s266_s4] ss:$0 sm:$0xff]  ;;  %s176_s4 = smov 8  }
   0xa   :  { %138 = vmatpush.msra.mxu2 %v67_v9  ;;  %93 = vmatpush.msra.mxu1 %v67_v9 }
   0xc   :  { %139 = vmatpush.msra.mxu2 %v66_v10  ;;  %94 = vmatpush.msra.mxu1 %v66_v10 }
   0xe   :  { %140 = vmatpush.msra.mxu2 %v65_v11  ;;  %95 = vmatpush.msra.mxu1 %v65_v11 }
  0x10   :  { %141 = vmatpush.msra.mxu2 %v64_v12  ;;  %96 = vmatpush.msra.mxu1 %v64_v12 }
  0x12   :  { %142 = vmatpush.msra.mxu2 %v63_v13  ;;  %97 = vmatpush.msra.mxu1 %v63_v13 }
  0x86   :  { %v55_v15 = vpop.f32.mrf.mxu0 }
  0x87   :  { %v56_v16 = vadd.f32 %v146_v14, %v55_v15 }
  0x89   :  { %v61_v17 = vmax.f32 %v56_v16, 0.0 }
  0x8b   :  { %129 = vmatmul.msk.f32.vlgmr.msra.gmra.mxu1 %vm75_vm1, %v61_v17 }
  0x8c   :  { %v58_v18 = vpop.f32.mrf.mxu3 }
  0x8d   :  { %v59_v19 = vadd.f32 %v146_v14, %v58_v18 }
  0x8f   :  { %v62_v20 = vmax.f32 %v59_v19, 0.0 }
  0x91   :  { %130 = vmatmul.msk.f32.vlgmr.msra.gmra.mxu2 %vm75_vm1, %v62_v20 }
 0x108   :  { %v99_v22 = vpop.f32.mrf.mxu1 }
 0x109   :  { %v100_v23 = vadd.f32 %v147_v21, %v99_v22 }
 0x10b   :  { %v105_v24 = vmax.f32 %v100_v23, 0.0 }
 0x10d   :  { %107 = vst.msk [vmem:[#allocation2] sm:$0xff] %vm31_vm0, %v105_v24 }
 0x114   :  { %v102_v25 = vpop.f32.mrf.mxu2 }
 0x115   :  { %v103_v26 = vadd.f32 %v147_v21, %v102_v25 }
 0x117   :  { %v106_v27 = vmax.f32 %v103_v26, 0.0 }
 0x119   :  { %108 = vst.msk [vmem:[#allocation2 + $0x8] sm:$0xff] %vm31_vm0, %v106_v27 }
 0x11a   :  { %121 = dma.vmem_to_hbm [thread:$0]  %s114_s2, 256, %s116_s25, [#allocation3], %s175_s26, %s175_s26, %s176_s4  }
 0x11b   :  { %172 = dma.done.wait [#allocation3], 256  }
 0x11c   :  { %173 = vsyncadd [#allocation3], 4294967040 }
 0x11d   :  { %126 = vsyncpa [#allocation3], 1 }

</bundles_post_ra>
